<compile_context>
chip_gen: v7x
topology: tpu7x:2x2x1
jax: 0.10.0
libtpu: 0.0.40
codegen_flags: <defaults>
</compile_context>

<pallas_src>
import functools

import jax
import jax.numpy as jnp
import jax.scipy.linalg as jsl
from jax.experimental import pallas as pl
from jax.experimental.pallas import tpu as pltpu


# ----------------------------- Pallas kernel ------------------------------ #
def ple_fused_kernel(h_ref,
                     w1_ref, b1_ref, s1_ref, h1_ref,
                     w2_ref, b2_ref, s2_ref, h2_ref,
                     gw_ref, gb_ref,
                     wt1_ref, bt1_ref, st1_ref, ht1_ref,
                     wt2_ref, bt2_ref,
                     out_ref, *, num_task, d2):
    h32 = h_ref[...]                                   # [B, H]  f32
    hb = h32.astype(jnp.bfloat16)                      # MXU operand

    # expert layer 1: shared + all task experts fused along the output axis
    z1 = jnp.dot(hb, w1_ref[...], preferred_element_type=jnp.float32) + b1_ref[...]
    z1 = z1 * s1_ref[...] + h1_ref[...]                # BN(eval) folded affine

    # expert layer 2: block-diagonal (each expert only sees its own features)
    z2 = jnp.dot(z1.astype(jnp.bfloat16), w2_ref[...],
                 preferred_element_type=jnp.float32) + b2_ref[...]
    z2 = z2 * s2_ref[...] + h2_ref[...]                # [B, (T+1)*D2]

    # gate of task 1 (reference forward reuses gates_out[0] for ALL tasks)
    g = jnp.dot(hb, gw_ref[...], preferred_element_type=jnp.float32) + gb_ref[...]
    g = g - jnp.max(g, axis=-1, keepdims=True)
    e = jnp.exp(g)
    inv = pl.reciprocal(jnp.sum(e, axis=-1, keepdims=True), approx=True)
    g = e * inv                                        # [B, 2]
    g0 = g[:, 0:1]
    g1 = 1.0 - g0                                      # two-way gate (shared_expert == 1)

    # CGC combine for all tasks at once
    s = z2[:, :d2]                                     # shared expert  [B, D2]
    t = z2[:, d2:]                                     # task experts   [B, T*D2]
    s_tiled = jnp.concatenate([s] * num_task, axis=-1)
    cgc = g0 * s_tiled + g1 * t                        # [B, T*D2]

    # towers: block-diagonal across tasks
    y = jnp.dot(cgc.astype(jnp.bfloat16), wt1_ref[...],
                preferred_element_type=jnp.float32) + bt1_ref[...]
    y = y * st1_ref[...] + ht1_ref[...]
    y = jnp.dot(y.astype(jnp.bfloat16), wt2_ref[...],
                preferred_element_type=jnp.float32) + bt2_ref[...]
    out_ref[...] = jax.nn.sigmoid(y)                   # [B, T] lane-dense single block


def ple_forward_pallas(hidden, fused, num_task, d2):
    B = hidden.shape[0]
    kernel = functools.partial(ple_fused_kernel, num_task=num_task, d2=d2)
    args = (hidden,
            fused['w1'], fused['b1'], fused['s1'], fused['h1'],
            fused['w2'], fused['b2'], fused['s2'], fused['h2'],
            fused['gw'], fused['gb'],
            fused['wt1'], fused['bt1'], fused['st1'], fused['ht1'],
            fused['wt2'], fused['bt2'])
    out = pl.pallas_call(
        kernel,
        out_shape=jax.ShapeDtypeStruct((B, num_task), jnp.float32),
        in_specs=[pl.BlockSpec(memory_space=pltpu.MemorySpace.VMEM)] * len(args),
        out_specs=pl.BlockSpec(memory_space=pltpu.MemorySpace.VMEM),
    )(*args)
    return [out[:, i:i + 1] for i in range(num_task)]


# --------------------------- parameter creation ---------------------------- #
def _folded_bn(n):
    # deterministic eval-mode BatchNorm1d folded into scale/shift
    idx = jnp.arange(n, dtype=jnp.float32)
    gamma = 1.0 + 0.05 * jnp.cos(idx)
    beta = 0.02 * jnp.sin(idx)
    rm = 0.01 * idx
    rv = 1.0 + 0.1 * (idx % 3)
    scale = gamma / jnp.sqrt(rv + 1e-5)
    shift = beta - rm * scale
    return scale[None, :], shift[None, :]


def init_params(key, user_fd, item_fd, emb_dim, hidden_dim, tower_dim,
                num_task, shared_expert=1, output_size=1):
    keys = iter(jax.random.split(key, 256))

    def lin(fan_in, fan_out):
        bound = 1.0 / jnp.sqrt(jnp.float32(fan_in))
        w = jax.random.uniform(next(keys), (fan_in, fan_out), jnp.float32, -bound, bound)
        b = jax.random.uniform(next(keys), (1, fan_out), jnp.float32, -bound, bound)
        return w, b

    emb = {}
    n_cate = 0
    n_dense = 0
    for name, (num, _idx) in {**user_fd, **item_fd}.items():
        if num > 1:
            emb[name] = jax.random.normal(next(keys), (num, emb_dim), jnp.float32) * 0.1
            n_cate += 1
        else:
            n_dense += 1
    H = emb_dim * n_cate + n_dense
    D1, D2 = hidden_dim
    T1 = tower_dim[1]

    p = {'emb': emb}
    # shared expert
    p['sw1'], p['sb1'] = lin(H, D1)
    p['ss1'], p['sh1'] = _folded_bn(D1)
    p['sw2'], p['sb2'] = lin(D1, D2)
    p['ss2'], p['sh2'] = _folded_bn(D2)
    # gate for task 1 (only gates_out[0] is ever used in the reference forward)
    p['gw'], p['gb'] = lin(H, shared_expert + 1)

    # task experts + towers (stacked along the task axis)
    tw1 = []; tb1 = []; ts1 = []; th1 = []
    tw2 = []; tb2 = []; ts2 = []; th2 = []
    ow1 = []; ob1 = []; os1 = []; oh1 = []
    ow2 = []; ob2 = []
    for _ in range(num_task):
        w, b = lin(H, D1); tw1.append(w); tb1.append(b)
        s, sh = _folded_bn(D1); ts1.append(s); th1.append(sh)
        w, b = lin(D1, D2); tw2.append(w); tb2.append(b)
        s, sh = _folded_bn(D2); ts2.append(s); th2.append(sh)
        w, b = lin(tower_dim[0], T1); ow1.append(w); ob1.append(b)
        s, sh = _folded_bn(T1); os1.append(s); oh1.append(sh)
        w, b = lin(T1, output_size); ow2.append(w); ob2.append(b)
    for name, lst in [('tw1', tw1), ('tb1', tb1), ('ts1', ts1), ('th1', th1),
                      ('tw2', tw2), ('tb2', tb2), ('ts2', ts2), ('th2', th2),
                      ('ow1', ow1), ('ob1', ob1), ('os1', os1), ('oh1', oh1),
                      ('ow2', ow2), ('ob2', ob2)]:
        p[name] = jnp.stack(lst, axis=0)
    return p, H


def fuse_params(p, num_task):
    """Fuse per-task weights for the single-shot kernel (bf16 matmul operands)."""
    T = num_task
    f = {}
    # expert layer 1: concat along the output axis (shared first, then tasks)
    f['w1'] = jnp.concatenate([p['sw1']] + [p['tw1'][i] for i in range(T)],
                              axis=1).astype(jnp.bfloat16)
    f['b1'] = jnp.concatenate([p['sb1']] + [p['tb1'][i] for i in range(T)], axis=1)
    f['s1'] = jnp.concatenate([p['ss1']] + [p['ts1'][i] for i in range(T)], axis=1)
    f['h1'] = jnp.concatenate([p['sh1']] + [p['th1'][i] for i in range(T)], axis=1)
    # expert layer 2: block-diagonal
    f['w2'] = jsl.block_diag(p['sw2'], *[p['tw2'][i] for i in range(T)]).astype(jnp.bfloat16)
    f['b2'] = jnp.concatenate([p['sb2']] + [p['tb2'][i] for i in range(T)], axis=1)
    f['s2'] = jnp.concatenate([p['ss2']] + [p['ts2'][i] for i in range(T)], axis=1)
    f['h2'] = jnp.concatenate([p['sh2']] + [p['th2'][i] for i in range(T)], axis=1)
    # gate (task 1)
    f['gw'] = p['gw'].astype(jnp.bfloat16)
    f['gb'] = p['gb']
    # tower layer 1: block-diagonal across tasks
    f['wt1'] = jsl.block_diag(*[p['ow1'][i] for i in range(T)]).astype(jnp.bfloat16)
    f['bt1'] = jnp.concatenate([p['ob1'][i] for i in range(T)], axis=1)
    f['st1'] = jnp.concatenate([p['os1'][i] for i in range(T)], axis=1)
    f['ht1'] = jnp.concatenate([p['oh1'][i] for i in range(T)], axis=1)
    # tower final layer: block-diagonal -> [T*T1, T*output_size]
    f['wt2'] = jsl.block_diag(*[p['ow2'][i] for i in range(T)]).astype(jnp.bfloat16)
    f['bt2'] = jnp.concatenate([p['ob2'][i] for i in range(T)], axis=1)
    return f


# ------------------------------- JAX glue ---------------------------------- #
def build_hidden(x, p, user_fd, item_fd):
    # TODO(synk): embedding gather + feature concat kept in plain JAX (data-dependent
    # gather on a handful of rows; not worth a manual Pallas DMA gather at this size).
    feats = []
    scene_feature = None
    for name, (num, idx) in user_fd.items():
        if num > 1:
            feats.append(p['emb'][name][x[:, idx].astype(jnp.int32)])
        else:
            feats.append(x[:, idx:idx + 1])
        if name == 'tab':
            scene_feature = x[:, idx].astype(jnp.int32)
    for name, (num, idx) in item_fd.items():
        if num > 1:
            feats.append(p['emb'][name][x[:, idx].astype(jnp.int32)])
        else:
            feats.append(x[:, idx:idx + 1])
    hidden = jnp.concatenate(feats, axis=1).astype(jnp.float32)
    return hidden, scene_feature


def ple_forward_ref(hidden, p, num_task):
    s = hidden @ p['sw1'] + p['sb1']; s = s * p['ss1'] + p['sh1']
    s = s @ p['sw2'] + p['sb2']; s = s * p['ss2'] + p['sh2']
    g = jax.nn.softmax(hidden @ p['gw'] + p['gb'], axis=-1)
    outs = []
    for i in range(num_task):
        t = hidden @ p['tw1'][i] + p['tb1'][i]; t = t * p['ts1'][i] + p['th1'][i]
        t = t @ p['tw2'][i] + p['tb2'][i]; t = t * p['ts2'][i] + p['th2'][i]
        cgc = g[:, 0:1] * s + g[:, 1:2] * t
        y = cgc @ p['ow1'][i] + p['ob1'][i]; y = y * p['os1'][i] + p['oh1'][i]
        y = jax.nn.sigmoid(y @ p['ow2'][i] + p['ob2'][i])
        outs.append(y)
    return outs


# --------------------------------- main ------------------------------------ #
if __name__ == "__main__":
    # small PLE configuration
    TASKS = ['click', 'like', 'comment', '_5s', '_10s', '_18s']
    NUM_TASK = len(TASKS)
    EMB_DIM = 8
    HIDDEN_DIM = [32, 16]
    TOWER_DIM = [16, 8]          # tower input dim must equal HIDDEN_DIM[-1]
    B = 8

    user_feature_dict = {'uid': (10, 0), 'tab': (5, 1), 'u_dense': (1, 2)}
    item_feature_dict = {'iid': (20, 3), 'i_dense': (1, 4)}

    key = jax.random.PRNGKey(0)
    k1, k2, k3, k4, k5, kp = jax.random.split(key, 6)
    uid = jax.random.randint(k1, (B,), 0, 10).astype(jnp.float32)
    tab = jax.random.randint(k2, (B,), 0, 5).astype(jnp.float32)
    udense = jax.random.uniform(k3, (B,), jnp.float32)
    iid = jax.random.randint(k4, (B,), 0, 20).astype(jnp.float32)
    idense = jax.random.uniform(k5, (B,), jnp.float32)
    x = jnp.stack([uid, tab, udense, iid, idense], axis=1)   # [B, 5]

    params, hidden_size = init_params(kp, user_feature_dict, item_feature_dict,
                                      EMB_DIM, HIDDEN_DIM, TOWER_DIM, NUM_TASK)
    fused = fuse_params(params, NUM_TASK)

    hidden, scene_feature = build_hidden(x, params, user_feature_dict, item_feature_dict)
    assert hidden.shape == (B, hidden_size)

    task_outputs = ple_forward_pallas(hidden, fused, NUM_TASK, HIDDEN_DIM[1])
    task_outputs = [jax.block_until_ready(o) for o in task_outputs]
    scene_feature = jax.block_until_ready(scene_feature)

    # sanity check against a pure-JAX f32 reference of the same math
    ref_outputs = ple_forward_ref(hidden, params, NUM_TASK)
    for got, want in zip(task_outputs, ref_outputs):
        assert got.shape == (B, 1)
        if not jnp.allclose(got, want, atol=2e-2, rtol=2e-2):
            raise AssertionError("Pallas output mismatch vs reference")

    print("KERNEL_OK")
</pallas_src>

<mosaic_0001>
module attributes {stable_mosaic.version = 11 : i64} {
  func.func @ple_fused_kernel(%arg0: memref<8x26xf32, #tpu.memory_space<vmem>>, %arg1: memref<26x224xbf16, #tpu.memory_space<vmem>>, %arg2: memref<1x224xf32, #tpu.memory_space<vmem>>, %arg3: memref<1x224xf32, #tpu.memory_space<vmem>>, %arg4: memref<1x224xf32, #tpu.memory_space<vmem>>, %arg5: memref<224x112xbf16, #tpu.memory_space<vmem>>, %arg6: memref<1x112xf32, #tpu.memory_space<vmem>>, %arg7: memref<1x112xf32, #tpu.memory_space<vmem>>, %arg8: memref<1x112xf32, #tpu.memory_space<vmem>>, %arg9: memref<26x2xbf16, #tpu.memory_space<vmem>>, %arg10: memref<1x2xf32, #tpu.memory_space<vmem>>, %arg11: memref<96x48xbf16, #tpu.memory_space<vmem>>, %arg12: memref<1x48xf32, #tpu.memory_space<vmem>>, %arg13: memref<1x48xf32, #tpu.memory_space<vmem>>, %arg14: memref<1x48xf32, #tpu.memory_space<vmem>>, %arg15: memref<48x6xbf16, #tpu.memory_space<vmem>>, %arg16: memref<1x6xf32, #tpu.memory_space<vmem>>, %arg17: memref<8x6xf32, #tpu.memory_space<vmem>>) attributes {dimension_semantics = [], scalar_prefetch = 0 : i64, scratch_operands = 0 : i64, tpu.core_type = #tpu.core_type<tc>} {
    %c0 = arith.constant 0 : index
    %c0_0 = arith.constant 0 : index
    %0 = vector.load %arg0[%c0, %c0_0] : memref<8x26xf32, #tpu.memory_space<vmem>>, vector<8x26xf32>
    %1 = arith.truncf %0 : vector<8x26xf32> to vector<8x26xbf16>
    %c0_1 = arith.constant 0 : index
    %c0_2 = arith.constant 0 : index
    %2 = vector.load %arg1[%c0_1, %c0_2] : memref<26x224xbf16, #tpu.memory_space<vmem>>, vector<26x224xbf16>
    %cst = arith.constant dense<0.000000e+00> : vector<8x224xf32>
    %3 = tpu.matmul %1, %2, %cst {dimension_numbers = #tpu.dot_dimension_numbers<[1], [0], [0], [1], [0, 0, 1, 1], [], []>} : vector<8x26xbf16>, vector<26x224xbf16>, vector<8x224xf32> -> vector<8x224xf32>
    %c0_3 = arith.constant 0 : index
    %c0_4 = arith.constant 0 : index
    %4 = vector.load %arg2[%c0_3, %c0_4] : memref<1x224xf32, #tpu.memory_space<vmem>>, vector<1x224xf32>
    %5 = vector.broadcast %4 : vector<1x224xf32> to vector<8x224xf32>
    %6 = arith.addf %3, %5 : vector<8x224xf32>
    %c0_5 = arith.constant 0 : index
    %c0_6 = arith.constant 0 : index
    %7 = vector.load %arg3[%c0_5, %c0_6] : memref<1x224xf32, #tpu.memory_space<vmem>>, vector<1x224xf32>
    %8 = vector.broadcast %7 : vector<1x224xf32> to vector<8x224xf32>
    %9 = arith.mulf %6, %8 : vector<8x224xf32>
    %c0_7 = arith.constant 0 : index
    %c0_8 = arith.constant 0 : index
    %10 = vector.load %arg4[%c0_7, %c0_8] : memref<1x224xf32, #tpu.memory_space<vmem>>, vector<1x224xf32>
    %11 = vector.broadcast %10 : vector<1x224xf32> to vector<8x224xf32>
    %12 = arith.addf %9, %11 : vector<8x224xf32>
    %13 = arith.truncf %12 : vector<8x224xf32> to vector<8x224xbf16>
    %c0_9 = arith.constant 0 : index
    %c0_10 = arith.constant 0 : index
    %14 = vector.load %arg5[%c0_9, %c0_10] : memref<224x112xbf16, #tpu.memory_space<vmem>>, vector<224x112xbf16>
    %cst_11 = arith.constant dense<0.000000e+00> : vector<8x112xf32>
    %15 = tpu.matmul %13, %14, %cst_11 {dimension_numbers = #tpu.dot_dimension_numbers<[1], [0], [0], [1], [0, 0, 1, 1], [], []>} : vector<8x224xbf16>, vector<224x112xbf16>, vector<8x112xf32> -> vector<8x112xf32>
    %c0_12 = arith.constant 0 : index
    %c0_13 = arith.constant 0 : index
    %16 = vector.load %arg6[%c0_12, %c0_13] : memref<1x112xf32, #tpu.memory_space<vmem>>, vector<1x112xf32>
    %17 = vector.broadcast %16 : vector<1x112xf32> to vector<8x112xf32>
    %18 = arith.addf %15, %17 : vector<8x112xf32>
    %c0_14 = arith.constant 0 : index
    %c0_15 = arith.constant 0 : index
    %19 = vector.load %arg7[%c0_14, %c0_15] : memref<1x112xf32, #tpu.memory_space<vmem>>, vector<1x112xf32>
    %20 = vector.broadcast %19 : vector<1x112xf32> to vector<8x112xf32>
    %21 = arith.mulf %18, %20 : vector<8x112xf32>
    %c0_16 = arith.constant 0 : index
    %c0_17 = arith.constant 0 : index
    %22 = vector.load %arg8[%c0_16, %c0_17] : memref<1x112xf32, #tpu.memory_space<vmem>>, vector<1x112xf32>
    %23 = vector.broadcast %22 : vector<1x112xf32> to vector<8x112xf32>
    %24 = arith.addf %21, %23 : vector<8x112xf32>
    %c0_18 = arith.constant 0 : index
    %c0_19 = arith.constant 0 : index
    %25 = vector.load %arg9[%c0_18, %c0_19] : memref<26x2xbf16, #tpu.memory_space<vmem>>, vector<26x2xbf16>
    %cst_20 = arith.constant dense<0.000000e+00> : vector<8x2xf32>
    %26 = tpu.matmul %1, %25, %cst_20 {dimension_numbers = #tpu.dot_dimension_numbers<[1], [0], [0], [1], [0, 0, 1, 1], [], []>} : vector<8x26xbf16>, vector<26x2xbf16>, vector<8x2xf32> -> vector<8x2xf32>
    %c0_21 = arith.constant 0 : index
    %c0_22 = arith.constant 0 : index
    %27 = vector.load %arg10[%c0_21, %c0_22] : memref<1x2xf32, #tpu.memory_space<vmem>>, vector<1x2xf32>
    %28 = vector.broadcast %27 : vector<1x2xf32> to vector<8x2xf32>
    %29 = arith.addf %26, %28 : vector<8x2xf32>
    %cst_23 = arith.constant dense<0xFF800000> : vector<8xf32>
    %30 = vector.multi_reduction <maximumf>, %29, %cst_23 [1] : vector<8x2xf32> to vector<8xf32>
    %31 = vector.shape_cast %30 : vector<8xf32> to vector<8x1xf32>
    %32 = vector.broadcast %31 : vector<8x1xf32> to vector<8x2xf32>
    %33 = arith.subf %29, %32 : vector<8x2xf32>
    %34 = math.exp %33 : vector<8x2xf32>
    %cst_24 = arith.constant dense<0.000000e+00> : vector<8xf32>
    %35 = vector.multi_reduction <add>, %34, %cst_24 [1] : vector<8x2xf32> to vector<8xf32>
    %36 = vector.shape_cast %35 : vector<8xf32> to vector<8x1xf32>
    %37 = tpu.reciprocal %36 {approx = true} : vector<8x1xf32> -> vector<8x1xf32>
    %38 = vector.broadcast %37 : vector<8x1xf32> to vector<8x2xf32>
    %39 = arith.mulf %34, %38 : vector<8x2xf32>
    %40 = vector.extract_strided_slice %39 {offsets = [0, 0], sizes = [8, 1], strides = [1, 1]} : vector<8x2xf32> to vector<8x1xf32>
    %cst_25 = arith.constant 1.000000e+00 : f32
    %41 = vector.broadcast %cst_25 : f32 to vector<8x1xf32>
    %42 = arith.subf %41, %40 : vector<8x1xf32>
    %43 = vector.extract_strided_slice %24 {offsets = [0, 0], sizes = [8, 16], strides = [1, 1]} : vector<8x112xf32> to vector<8x16xf32>
    %44 = vector.extract_strided_slice %24 {offsets = [0, 16], sizes = [8, 96], strides = [1, 1]} : vector<8x112xf32> to vector<8x96xf32>
    %45 = tpu.concatenate %43, %43, %43, %43, %43, %43 in 1 : vector<8x16xf32>, vector<8x16xf32>, vector<8x16xf32>, vector<8x16xf32>, vector<8x16xf32>, vector<8x16xf32> -> vector<8x96xf32>
    %46 = vector.broadcast %40 : vector<8x1xf32> to vector<8x96xf32>
    %47 = arith.mulf %46, %45 : vector<8x96xf32>
    %48 = vector.broadcast %42 : vector<8x1xf32> to vector<8x96xf32>
    %49 = arith.mulf %48, %44 : vector<8x96xf32>
    %50 = arith.addf %47, %49 : vector<8x96xf32>
    %51 = arith.truncf %50 : vector<8x96xf32> to vector<8x96xbf16>
    %c0_26 = arith.constant 0 : index
    %c0_27 = arith.constant 0 : index
    %52 = vector.load %arg11[%c0_26, %c0_27] : memref<96x48xbf16, #tpu.memory_space<vmem>>, vector<96x48xbf16>
    %cst_28 = arith.constant dense<0.000000e+00> : vector<8x48xf32>
    %53 = tpu.matmul %51, %52, %cst_28 {dimension_numbers = #tpu.dot_dimension_numbers<[1], [0], [0], [1], [0, 0, 1, 1], [], []>} : vector<8x96xbf16>, vector<96x48xbf16>, vector<8x48xf32> -> vector<8x48xf32>
    %c0_29 = arith.constant 0 : index
    %c0_30 = arith.constant 0 : index
    %54 = vector.load %arg12[%c0_29, %c0_30] : memref<1x48xf32, #tpu.memory_space<vmem>>, vector<1x48xf32>
    %55 = vector.broadcast %54 : vector<1x48xf32> to vector<8x48xf32>
    %56 = arith.addf %53, %55 : vector<8x48xf32>
    %c0_31 = arith.constant 0 : index
    %c0_32 = arith.constant 0 : index
    %57 = vector.load %arg13[%c0_31, %c0_32] : memref<1x48xf32, #tpu.memory_space<vmem>>, vector<1x48xf32>
    %58 = vector.broadcast %57 : vector<1x48xf32> to vector<8x48xf32>
    %59 = arith.mulf %56, %58 : vector<8x48xf32>
    %c0_33 = arith.constant 0 : index
    %c0_34 = arith.constant 0 : index
    %60 = vector.load %arg14[%c0_33, %c0_34] : memref<1x48xf32, #tpu.memory_space<vmem>>, vector<1x48xf32>
    %61 = vector.broadcast %60 : vector<1x48xf32> to vector<8x48xf32>
    %62 = arith.addf %59, %61 : vector<8x48xf32>
    %63 = arith.truncf %62 : vector<8x48xf32> to vector<8x48xbf16>
    %c0_35 = arith.constant 0 : index
    %c0_36 = arith.constant 0 : index
    %64 = vector.load %arg15[%c0_35, %c0_36] : memref<48x6xbf16, #tpu.memory_space<vmem>>, vector<48x6xbf16>
    %cst_37 = arith.constant dense<0.000000e+00> : vector<8x6xf32>
    %65 = tpu.matmul %63, %64, %cst_37 {dimension_numbers = #tpu.dot_dimension_numbers<[1], [0], [0], [1], [0, 0, 1, 1], [], []>} : vector<8x48xbf16>, vector<48x6xbf16>, vector<8x6xf32> -> vector<8x6xf32>
    %c0_38 = arith.constant 0 : index
    %c0_39 = arith.constant 0 : index
    %66 = vector.load %arg16[%c0_38, %c0_39] : memref<1x6xf32, #tpu.memory_space<vmem>>, vector<1x6xf32>
    %67 = vector.broadcast %66 : vector<1x6xf32> to vector<8x6xf32>
    %68 = arith.addf %65, %67 : vector<8x6xf32>
    %69 = arith.negf %68 : vector<8x6xf32>
    %70 = math.exp %69 : vector<8x6xf32>
    %cst_40 = arith.constant 1.000000e+00 : f32
    %71 = vector.broadcast %cst_40 : f32 to vector<8x6xf32>
    %72 = arith.addf %71, %70 : vector<8x6xf32>
    %73 = arith.divf %71, %72 : vector<8x6xf32>
    %c0_41 = arith.constant 0 : index
    %c0_42 = arith.constant 0 : index
    %74 = vector.load %arg17[%c0_41, %c0_42] : memref<8x6xf32, #tpu.memory_space<vmem>>, vector<8x6xf32>
    tpu.vector_store %arg17[%c0_41, %c0_42], %73 {strides = array<i32>} : memref<8x6xf32, #tpu.memory_space<vmem>>, vector<8x6xf32>,
    return
  }
}

</mosaic_0001>

<bundles_post_ra>
// kernel: tpu_custom_call.1
= control target key start
LH: loop header
LB: loop body
LE: loop exit
PB: predicated region body
PF: predicated region fallthrough
CT: control target
= control target key end

     0   :  { %s1362_s0 = inlined_call_operand.hbm [shape: f32[8,26], index: 0, kind: input, shape index: {}]   ;;  %s1363_s1 = inlined_call_operand.hbm [shape: bf16[26,224], index: 1, kind: input, shape index: {}]   ;;  %s1364_s2 = inlined_call_operand.vmem [shape: f32[1,224], index: 2, kind: input, shape index: {}]   ;;  %s1365_s3 = inlined_call_operand.hbm [shape: f32[1,224], index: 3, kind: input, shape index: {}]   ;;  %s1366_s4 = inlined_call_operand.hbm [shape: f32[1,224], index: 4, kind: input, shape index: {}]   ;;  %s1367_s5 = inlined_call_operand.vmem [shape: bf16[224,112], index: 5, kind: input, shape index: {}]   ;;  %s1368_s6 = inlined_call_operand.vmem [shape: f32[1,112], index: 6, kind: input, shape index: {}]   ;;  %s1369_s7 = inlined_call_operand.hbm [shape: f32[1,112], index: 7, kind: input, shape index: {}]   ;;  %s1370_s8 = inlined_call_operand.vmem [shape: f32[1,112], index: 8, kind: input, shape index: {}]   ;;  %s1371_s9 = inlined_call_operand.vmem [shape: bf16[26,2], index: 9, kind: input, shape index: {}]   ;;  %s1372_s10 = inlined_call_operand.vmem [shape: f32[1,2], index: 10, kind: input, shape index: {}]   ;;  %s1373_s11 = inlined_call_operand.vmem [shape: bf16[96,48], index: 11, kind: input, shape index: {}]   ;;  %s1374_s12 = inlined_call_operand.vmem [shape: f32[1,48], index: 12, kind: input, shape index: {}]   ;;  %s1375_s13 = inlined_call_operand.vmem [shape: f32[1,48], index: 13, kind: input, shape index: {}]   ;;  %s1376_s14 = inlined_call_operand.vmem [shape: f32[1,48], index: 14, kind: input, shape index: {}]   ;;  %s1377_s15 = inlined_call_operand.vmem [shape: bf16[48,6], index: 15, kind: input, shape index: {}]   ;;  %s1378_s16 = inlined_call_operand.vmem [shape: f32[1,6], index: 16, kind: input, shape index: {}]   ;;  %s1379_s17 = inlined_call_operand.hbm [shape: f32[8,6], index: 17, kind: output, shape index: {}]  }
   0x1   :  { %1383 = sst [smem:[#allocation16_spill]] %s1362_s0 }
   0x2   :  { %1384 = sst [smem:[#allocation17_spill]] %s1363_s1 }
   0x3   :  { %1385 = sst [smem:[#allocation18_spill]] %s1378_s16 }
   0x4   :  { %1386 = sst [smem:[#allocation19_spill]] %s1379_s17 }
   0x5   :  { %22 = vsyncpa [#allocation3], 0 }
   0x6   :  { %23 = vsyncpa [#allocation6], 0 }
   0x7   :  { %24 = vsyncpa [#allocation9], 0 }
   0x8   :  { %25 = vsyncpa [#allocation4], 0  ;;  %s1041_s24 = smov [#allocation5]   ;;  %s1387_s28 = sld [smem:[#allocation17_spill]] }
   0x9   :  { %s41_s25 = sshll.u32 %s1041_s24, 4  ;;  %s42_s25 = int_to_ptr.vmem [resolvable:$true] %s41_s25 }
   0xe   :  { %s901_s29 = scalar_lea.hbm %s1387_s28, 512 }
   0xf   :  { %p902_p0 = scmp.ne.s32.totalorder %s1387_s28, %s901_s29  ;;  %p905_p1 = scmp.lt.u32.totalorder %s901_s29, %s1387_s28 }
  0x11   :  { %p907_p2 = pnand %p905_p1, %p902_p0 }
  0x13   :  { %910 = shalt.err (!%p907_p2)
}
  0x14   :  { %s911_s1 = scalar_lea.vmem %s42_s25, 512  ;;  %p916_p4 = scmp.lt.s32.totalorder %s42_s25, %s42_s25 }
  0x15   :  { %p912_p3 = scmp.ne.s32.totalorder %s42_s25, %s911_s1  ;;  %p917_p5 = scmp.lt.s32.totalorder %s911_s1, %s911_s1 }
  0x17   :  { %p918_p6 = por %p917_p5, %p916_p4 }
  0x19   :  { %p919_p7 = pnand %p918_p6, %p912_p3 }
  0x1b   :  { %922 = shalt.err (!%p919_p7)
}
  0x1c   :  { %s1042_s20 = smov 128   ;;  %s1043_s21 = smov 8  }
  0x1d   :  { %47 = dma.hbm_to_vmem [thread:$0]  %s1387_s28, 512, %s42_s25, [#allocation6], %s1042_s20, %s1042_s20, %s1043_s21  }
  0x1e   :  { %s1044_s24 = smov [#allocation8]   ;;  %s1045_s27 = smov [#allocation2]  }
  0x1f   :  { %s66_s26 = sshll.u32 %s1044_s24, 4  ;;  %s32_s29 = sshll.u32 %s1045_s27, 4  ;;  %s67_s26 = int_to_ptr.vmem [resolvable:$true] %s66_s26  ;;  %s33_s29 = int_to_ptr.vmem [resolvable:$true] %s32_s29 }
  0x20   :  { %s923_s18 = scalar_lea.hbm %s1366_s4, 32 }
  0x21   :  { %p924_p8 = scmp.ne.s32.totalorder %s1366_s4, %s923_s18  ;;  %p927_p9 = scmp.lt.u32.totalorder %s923_s18, %s1366_s4 }
  0x23   :  { %p929_p10 = pnand %p927_p9, %p924_p8 }
  0x25   :  { %932 = shalt.err (!%p929_p10)
}
  0x26   :  { %s933_s25 = scalar_lea.vmem %s67_s26, 32  ;;  %p938_p12 = scmp.lt.s32.totalorder %s67_s26, %s67_s26 }
  0x27   :  { %p934_p11 = scmp.ne.s32.totalorder %s67_s26, %s933_s25  ;;  %p939_p13 = scmp.lt.s32.totalorder %s933_s25, %s933_s25 }
  0x29   :  { %p940_p0 = por %p939_p13, %p938_p12 }
  0x2b   :  { %p941_p1 = pnand %p940_p0, %p934_p11 }
  0x2d   :  { %944 = shalt.err (!%p941_p1)
}
  0x2e   :  { %69 = dma.hbm_to_vmem [thread:$0]  %s1366_s4, 32, %s67_s26, [#allocation9]  }
  0x2f   :  { %s1388_s23 = sld [smem:[#allocation16_spill]] }
  0x35   :  { %s945_s24 = scalar_lea.hbm %s1388_s23, 128 }
  0x36   :  { %p946_p2 = scmp.ne.s32.totalorder %s1388_s23, %s945_s24  ;;  %p949_p3 = scmp.lt.u32.totalorder %s945_s24, %s1388_s23 }
  0x38   :  { %p951_p4 = pnand %p949_p3, %p946_p2 }
  0x3a   :  { %954 = shalt.err (!%p951_p4)
}
  0x3b   :  { %s955_s30 = scalar_lea.vmem %s33_s29, 128  ;;  %p960_p6 = scmp.lt.s32.totalorder %s33_s29, %s33_s29 }
  0x3c   :  { %p956_p5 = scmp.ne.s32.totalorder %s33_s29, %s955_s30  ;;  %p961_p7 = scmp.lt.s32.totalorder %s955_s30, %s955_s30 }
  0x3e   :  { %p962_p8 = por %p961_p7, %p960_p6 }
  0x40   :  { %p963_p9 = pnand %p962_p8, %p956_p5 }
  0x42   :  { %966 = shalt.err (!%p963_p9)
}
  0x43   :  { %35 = dma.hbm_to_vmem [thread:$0]  %s1388_s23, 128, %s33_s29, [#allocation3]  }
  0x44   :  { %s1046_s18 = smov [#allocation7]   ;;  %s1047_s1 = smov [#allocation10]  }
  0x45   :  { %s56_s19 = sshll.u32 %s1046_s18, 4  ;;  %s80_s25 = sshll.u32 %s1047_s1, 4  ;;  %s57_s19 = int_to_ptr.vmem [resolvable:$true] %s56_s19  ;;  %s81_s25 = int_to_ptr.vmem [resolvable:$true] %s80_s25 }
  0x46   :  { %s967_s21 = scalar_lea.hbm %s1365_s3, 32 }
  0x47   :  { %p968_p10 = scmp.ne.s32.totalorder %s1365_s3, %s967_s21  ;;  %p971_p11 = scmp.lt.u32.totalorder %s967_s21, %s1365_s3 }
  0x49   :  { %p973_p12 = pnand %p971_p11, %p968_p10 }
  0x4b   :  { %976 = shalt.err (!%p973_p12)
}
  0x4c   :  { %s977_s29 = scalar_lea.vmem %s57_s19, 32  ;;  %p982_p0 = scmp.lt.s32.totalorder %s57_s19, %s57_s19 }
  0x4d   :  { %p978_p13 = scmp.ne.s32.totalorder %s57_s19, %s977_s29  ;;  %p983_p1 = scmp.lt.s32.totalorder %s977_s29, %s977_s29 }
  0x4f   :  { %p984_p2 = por %p983_p1, %p982_p0 }
  0x51   :  { %p985_p3 = pnand %p984_p2, %p978_p13 }
  0x53   :  { %988 = shalt.err (!%p985_p3)
}
  0x54   :  { %59 = dma.hbm_to_vmem [thread:$0]  %s1365_s3, 32, %s57_s19, [#allocation6]  }
  0x55   :  { %s989_s4 = scalar_lea.hbm %s1369_s7, 16 }
  0x56   :  { %p990_p4 = scmp.ne.s32.totalorder %s1369_s7, %s989_s4  ;;  %p993_p5 = scmp.lt.u32.totalorder %s989_s4, %s1369_s7 }
  0x58   :  { %p995_p6 = pnand %p993_p5, %p990_p4 }
  0x5a   :  { %998 = shalt.err (!%p995_p6)
}
  0x5b   :  { %s999_s20 = scalar_lea.vmem %s81_s25, 16  ;;  %s1003_s21 = scalar_lea.vmem %s81_s25, 32 }
  0x5c   :  { %p1000_p7 = scmp.ne.s32.totalorder %s81_s25, %s999_s20  ;;  %p1004_p8 = scmp.lt.s32.totalorder %s81_s25, %s81_s25 }
  0x5d   :  { %p1005_p9 = scmp.lt.s32.totalorder %s1003_s21, %s999_s20 }
  0x5f   :  { %p1006_p10 = por %p1005_p9, %p1004_p8 }
  0x61   :  { %p1007_p11 = pnand %p1006_p10, %p1000_p7 }
  0x63   :  { %1010 = shalt.err (!%p1007_p11)
}
  0x64   :  { %83 = dma.hbm_to_vmem [thread:$0]  %s1369_s7, 16, %s81_s25, [#allocation9]  }
  0x65   :  { %1033 = dma.done.wait [#allocation3], 128  }
  0x66   :  { %1034 = vsyncadd [#allocation3], 4294967168 }
  0x67   :  { %1035 = dma.done.wait [#allocation6], 544  }
  0x68   :  { %1036 = vsyncadd [#allocation6], 4294966752 }
  0x69   :  { %1037 = dma.done.wait [#allocation9], 48  }
  0x6a   :  { %1038 = vsyncadd [#allocation9], 4294967248  ;;  %v1048_v0 = vmov 0   ;;  %v862_v1 = vld [vmem:[#allocation5 + $0x4] ss:$8 sps:$4 sm:$0xff]   ;;  %vm158_vm0 = vcmask 1044480   ;;  %v126_v26 = vlaneseq }
  0x6b   :  { %197 = vmatprep.mubr.bf16.mxu0 %v1048_v0  ;;  %359 = vmatprep.subr.bf16.mxu1 %v1048_v0  ;;  %v864_v2 = vld [vmem:[#allocation5] ss:$8 sps:$4 sm:$0xff]   ;;  %v865_v3 = vld [vmem:[#allocation5 + $0x14] ss:$8 sps:$4 sm:$0x1f]   ;;  %vm154_vm1 = vcmask 211968  }
  0x6c   :  { %860 = vset.pattern.permute.xlu1 %v1048_v0  ;;  %861 = vset.pattern.permute.xlu0 %v1048_v0  ;;  %v867_v4 = vld [vmem:[#allocation5 + $0x10] ss:$8 sps:$4 sm:$0x1f]   ;;  %v869_v10 = vld [vmem:[%s1371_s9 + $0x8] sm:$0x1f]   ;;  %v1049_v11 = vmov 0.0  }
  0x6d   :  { %165 = vmatprep.subr.bf16.mxu0 %v862_v1  ;;  %v118_v5 = vld [vmem:[#allocation2] sm:$0xff]  ;;  %v160_v6 = vsel %vm158_vm0, %v867_v4, 0  ;;  %v871_v12 = vld [vmem:[%s1367_s5 + $0x8] sm:$0xff]   ;;  %vm1050_vm2 = vmmov 0   ;;  %v438_v13 = vsel %vm158_vm0, %v869_v10, 0  ;;  %v872_v14 = vld [vmem:[%s1367_s5 + $0x10] sm:$0xff]  }
  0x6e   :  { %166 = vmatpush1.bf16.msra.mxu0 %v864_v2  ;;  %v868_v7 = vld [vmem:[%s1371_s9] sm:$0xff]   ;;  %v119_v8 = vpack.c.bf16 %v118_v5, %v118_v5  ;;  %v873_v15 = vld [vmem:[%s1367_s5 + $0x18] sm:$0xff]   ;;  %v875_v17 = vld [vmem:[%s1367_s5 + $0x28] sm:$0xff]   ;;  %v127_v27 = vshrl.u32 %v126_v26, 7  ;;  %vm355_vm3 = vcmask 785408   ;;  %vm480_vm4 = vcmask 15360  }
  0x6f   :  { %755 = vmatprep.subr.msk.bf16.mxu0 %vm158_vm0, %v865_v3  ;;  %v870_v9 = vld [vmem:[%s1367_s5] sm:$0xff]   ;;  %v876_v18 = vld [vmem:[%s1367_s5 + $0x30] sm:$0xff]   ;;  %v877_v19 = vld [vmem:[%s1367_s5 + $0x38] sm:$0xff]   ;;  %s1051_s28 = smov 16   ;;  %s1053_s20 = smov 48   ;;  %vm509_vm5 = vcmask 130048  }
  0x70   :  { %360 = vmatpush1.bf16.msra.mxu1 %v870_v9  ;;  %v874_v16 = vld [vmem:[%s1367_s5 + $0x20] sm:$0xff]   ;;  %v879_v21 = vld [vmem:[%s1367_s5 + $0x48] sm:$0xff]   ;;  %v880_v22 = vld [vmem:[%s1367_s5 + $0x50] sm:$0xff]   ;;  %v128_v28 = vsub.s32 0, %v127_v27  ;;  %v132_v30 = vsub.s32 1, %v127_v27  ;;  %s1054_s21 = smov 64  }
  0x71   :  { %361 = vmatprep.subr.bf16.mxu1 %v1048_v0  ;;  %v878_v20 = vld [vmem:[%s1367_s5 + $0x40] sm:$0xff]   ;;  %v881_v23 = vld [vmem:[%s1367_s5 + $0x58] sm:$0xff]   ;;  %v883_v25 = vld [vmem:[%s1367_s5 + $0x68] sm:$0xff]   ;;  %s1056_s0 = smov 112   ;;  %vm511_vm6 = vcmask 261120   ;;  %vm513_vm7 = vcmask 392192  }
  0x72   :  { %168 = vmatpush1.bf16.msra.mxu0 %v160_v6  ;;  %v882_v24 = vld [vmem:[%s1367_s5 + $0x60] sm:$0xff]   ;;  %v206_v31 = vld [vmem:[#allocation7] sm:$0x3]  ;;  %v220_v34 = vld [vmem:[#allocation8] sm:$0x3]  ;;  %vm515_vm8 = vcmask 523264  }
  0x73   :  { %809 = vmatprep.subr.bf16.mxu0 %v1049_v11  ;;  %v124_v29 = vld [vmem:[%s1364_s2] sm:$0x3]  ;;  %v211_v35 = vrot.slane %v206_v31, %v128_v28  ;;  %v215_v37 = vrot.slane %v206_v31, %v132_v30  ;;  %v225_v40 = vrot.slane %v220_v34, %v128_v28  ;;  %v229_v43 = vrot.slane %v220_v34, %v132_v30  ;;  %v773_v1 = vld [vmem:[#allocation10] ss:$0 sm:$0xff] }
  0x74   :  { %362 = vmatpush1.bf16.msra.mxu1 %v871_v12  ;;  %v129_v32 = vrot.slane %v124_v29, %v128_v28  ;;  %v133_v33 = vrot.slane %v124_v29, %v132_v30  ;;  %v775_v48 = vld [vmem:[%s1372_s10] ss:$0 sm:$0xff]  ;;  %vm517_vm9 = vcmask 654336   ;;  %vm732_vm10 = vcmask 48128  }
  0x75   :  { %756 = vmatmul.mubr.msk.bf16.vlgmr.msra.gmra.mrb[0].mxu0 %vm154_vm1, %v119_v8  ;;  %363 = vmatprep.subr.bf16.mxu1 %v1048_v0  ;;  %v757_v63 = vld [vmem:[%s1368_s6] ss:$0 sm:$0xff]  ;;  %s1052_s6 = smov 32  }
  0x76   :  { %810 = vmatpush3.bf16.msra.mxu0 %v868_v7  ;;  %813 = vmatprep.mubr.msk.bf16.mxu0 %vm1050_vm2, %v1049_v11  ;;  %v774_v4 = vld [vmem:[%s1370_s8] ss:$0 sm:$0xff]  ;;  %s1055_s8 = smov 80  }
  0x77   :  { %811 = vmatprep.subr.bf16.mxu0 %v1049_v11 }
  0x78   :  { %364 = vmatpush1.bf16.msra.mxu1 %v872_v14  ;;  %v884_v14 = vld [vmem:[%s1373_s11] sm:$0xff]  }
  0x79   :  { %365 = vmatprep.subr.bf16.mxu1 %v1048_v0 }
  0x7a   :  { %812 = vmatpush3.bf16.msra.mxu0 %v438_v13 }
  0x7b   :  { %817 = vmatprep.subr.bf16.mxu0 %v1049_v11 }
  0x7c   :  { %366 = vmatpush1.bf16.msra.mxu1 %v873_v15  ;;  %v885_v15 = vld [vmem:[%s1373_s11 + $0x8] sm:$0xff]  }
  0x7d   :  { %814 = vmatmul.mubr.msk.bf16.vlgmr.msra.gmra.mrb[4].mxu0 %vm154_vm1, %v119_v8  ;;  %367 = vmatprep.subr.bf16.mxu1 %v1048_v0 }
  0x7e   :  { %829 = vmatprep.mubr.msk.bf16.mxu0 %vm1050_vm2, %v1049_v11  ;;  %818 = vmatpush3.bf16.msra.mxu0 %v884_v14 }
  0x7f   :  { %819 = vmatprep.subr.bf16.mxu0 %v1049_v11 }
  0x80   :  { %368 = vmatpush1.bf16.msra.mxu1 %v874_v16  ;;  %v886_v16 = vld [vmem:[%s1373_s11 + $0x10] sm:$0xff]  }
  0x81   :  { %369 = vmatprep.subr.bf16.mxu1 %v1048_v0 }
  0x82   :  { %820 = vmatpush3.bf16.msra.mxu0 %v885_v15 }
  0x83   :  { %821 = vmatprep.subr.bf16.mxu0 %v1049_v11 }
  0x84   :  { %370 = vmatpush1.bf16.msra.mxu1 %v875_v17  ;;  %v887_v17 = vld [vmem:[%s1373_s11 + $0x18] sm:$0xff]  }
  0x85   :  { %371 = vmatprep.subr.bf16.mxu1 %v1048_v0 }
  0x86   :  { %822 = vmatpush3.bf16.msra.mxu0 %v886_v16 }
  0x87   :  { %823 = vmatprep.subr.bf16.mxu0 %v1049_v11 }
  0x88   :  { %372 = vmatpush1.bf16.msra.mxu1 %v876_v18  ;;  %v888_v18 = vld [vmem:[%s1373_s11 + $0x20] sm:$0xff]  }
  0x89   :  { %373 = vmatprep.subr.bf16.mxu1 %v1048_v0 }
  0x8a   :  { %824 = vmatpush3.bf16.msra.mxu0 %v887_v17 }
  0x8b   :  { %825 = vmatprep.subr.bf16.mxu0 %v1049_v11 }
  0x8c   :  { %374 = vmatpush1.bf16.msra.mxu1 %v877_v19  ;;  %v889_v19 = vld [vmem:[%s1373_s11 + $0x28] sm:$0xff]  }
  0x8d   :  { %375 = vmatprep.subr.bf16.mxu1 %v1048_v0 }
  0x8e   :  { %826 = vmatpush3.bf16.msra.mxu0 %v888_v18 }
  0x8f   :  { %827 = vmatprep.subr.bf16.mxu0 %v1049_v11 }
  0x90   :  { %376 = vmatpush1.bf16.msra.mxu1 %v878_v20 }
  0x91   :  { %377 = vmatprep.subr.bf16.mxu1 %v1048_v0 }
  0x92   :  { %828 = vmatpush3.bf16.msra.mxu0 %v889_v19 }
  0x93   :  { %833 = vmatprep.subr.bf16.mxu0 %v1049_v11 }
  0x94   :  { %378 = vmatpush1.bf16.msra.mxu1 %v879_v21 }
  0x95   :  { %379 = vmatprep.subr.bf16.mxu1 %v1048_v0 }
  0x98   :  { %380 = vmatpush1.bf16.msra.mxu1 %v880_v22 }
  0x99   :  { %381 = vmatprep.subr.bf16.mxu1 %v1048_v0 }
  0x9c   :  { %382 = vmatpush1.bf16.msra.mxu1 %v881_v23 }
  0x9d   :  { %383 = vmatprep.subr.bf16.mxu1 %v1048_v0 }
  0xa0   :  { %384 = vmatpush1.bf16.msra.mxu1 %v882_v24 }
  0xa1   :  { %385 = vmatprep.subr.bf16.mxu1 %v1048_v0 }
  0xa4   :  { %386 = vmatpush1.bf16.msra.mxu1 %v883_v25 }
 0x148   :  { %v199_v36 = vpop.f32.mrb[0].mxu0 }
 0x149   :  { %v200_v38 = vadd.f32 %v199_v36, %v129_v32  ;;  %v201_v39 = vpop.f32.mrb[1].mxu0  ;;  %v890_v36 = vld [vmem:[%s1377_s15] sm:$0xff]  }
 0x14a   :  { %v202_v41 = vadd.f32 %v201_v39, %v133_v33  ;;  %v203_v42 = vpop.f32.mrb[2].mxu0  ;;  %v892_v39 = vld [vmem:[%s1377_s15 + $0x10] sm:$0xff]  }
 0x14b   :  { %v218_v44 = vmul.f32 %v211_v35, %v200_v38  ;;  %v204_v45 = vpop.f32.mrb[3].mxu0  ;;  %v891_v38 = vld [vmem:[%s1377_s15 + $0x8] sm:$0xff]   ;;  %v787_v42 = vld [vmem:[%s1375_s13] ss:$0 sm:$0xff]  ;;  %s1057_s13 = smov [#allocation11]  }
 0x14c   :  { %v219_v46 = vmul.f32 %v215_v37, %v202_v41 }
 0x14d   :  { %v232_v47 = vadd.f32 %v225_v40, %v218_v44  ;;  %v779_v40 = vld [vmem:[%s1374_s12] ss:$0 sm:$0xff] }
 0x14e   :  { %v233_v49 = vadd.f32 %v229_v43, %v219_v46 }
 0x14f   :  { %v234_v54 = vpack.c.bf16 %v232_v47, %v232_v47 }
 0x150   :  { %v474_v50 = vpop.f32.mrb[4].mxu0  ;;  %v235_v51 = vpack.c.bf16 %v233_v49, %v233_v49 }
 0x151   :  { %v475_v52 = vadd.f32 %v775_v48, %v474_v50  ;;  %v815_v53 = vpop.f32.mrb[5].mxu0 }
 0x152   :  { %772 = vmatprep.mubr.msk.bf16.mxu1 %vm355_vm3, %v235_v51  ;;  %v477_v55 = vpop.f32.mrb[6].mxu0 }
 0x153   :  { %392 = vmatmul.mubr.bf16.vlgmr.msra.gmra.mrb[0].mxu1 %v234_v54  ;;  %v816_v56 = vpop.f32.mrb[7].mxu0  ;;  %v481_v57 = vsel %vm480_vm4, %v475_v52, -inf }
 0x154   :  { %482 = vmax.xlane.f32.xlu0 %v481_v57 }
 0x1e1   :  { %v483_v58 = vpop.xlane.xlu0 %482 }
 0x1e2   :  { %v484_v59 = vsub.f32 %v475_v52, %v483_v58 }
 0x1e4   :  { %v485_v60 = vmul.f32 1.442695, %v484_v59 }
 0x1e6   :  { %893 = vpow2.f32 %v485_v60 }
 0x1f0   :  { %v894_v61 = vpop.eup %893 }
 0x1f1   :  { %v487_v62 = vsel %vm480_vm4, %v894_v61, 0.0 }
 0x1f2   :  { %488 = vadd.xlane.f32.xlu0 %v487_v62 }
 0x226   :  { %v393_v0 = vpop.f32.mrb[0].mxu1 }
 0x227   :  { %v394_v2 = vadd.f32 %v757_v63, %v393_v0  ;;  %v395_v3 = vpop.f32.mrb[1].mxu1 }
 0x228   :  { %v396_v5 = vpop.f32.mrb[2].mxu1 }
 0x229   :  { %v406_v6 = vmul.f32 %v773_v1, %v394_v2  ;;  %v397_v7 = vpop.f32.mrb[3].mxu1 }
 0x22b   :  { %v414_v8 = vadd.f32 %v774_v4, %v406_v6 }
 0x22d   :  { %494 = vrot.lane.b32.xlu0 %v414_v8, %s1051_s28 }
 0x27f   :  { %v489_v9 = vpop.xlane.xlu0 %488 }
 0x280   :  { %895 = vrcp.f32 %v489_v9 }
 0x28a   :  { %v896_v10 = vpop.eup %895 }
 0x28b   :  { %v491_v12 = vmul.f32 %v896_v10, %v894_v61 }
 0x28d   :  { %v492_v13 = vsub.f32 1.0, %v491_v12 }
 0x28f   :  { %527 = vperm.xlu1 %860, %v492_v13  }
 0x293   :  { %521 = vperm.xlu1 %860, %v491_v12  }
 0x297   :  { %497 = vrot.lane.b32.xlu1 %v414_v8, %s1052_s6 }
 0x29b   :  { %500 = vrot.lane.b32.xlu1 %v414_v8, %s1053_s20 }
 0x29f   :  { %503 = vrot.lane.b32.xlu1 %v414_v8, %s1054_s21  ;;  %v495_v26 = vpop.permute.xlu0 %494  ;;  %s1389_s21 = sld [smem:[#allocation18_spill]] }
 0x2a0   :  { %v510_v27 = vsel %vm509_vm5, %v414_v8, %v495_v26 }
 0x2a3   :  { %506 = vrot.lane.b32.xlu1 %v414_v8, %s1055_s8 }
 0x2a5   :  { %v789_v50 = vld [vmem:[%s1389_s21] ss:$0 sm:$0xff] }
 0x30e   :  { %v528_v20 = vpop.permute.xlu1 %527 }
 0x30f   :  { %v530_v21 = vmul.f32 %v528_v20, %v414_v8 }
 0x311   :  { %532 = vrot.lane.b32.xlu1 %v530_v21, %s1056_s0 }
 0x312   :  { %v522_v22 = vpop.permute.xlu1 %521 }
 0x316   :  { %v498_v23 = vpop.permute.xlu1 %497 }
 0x317   :  { %v512_v28 = vsel %vm511_vm6, %v510_v27, %v498_v23 }
 0x31a   :  { %v501_v24 = vpop.permute.xlu1 %500 }
 0x31b   :  { %v514_v30 = vsel %vm513_vm7, %v512_v28, %v501_v24 }
 0x31e   :  { %v504_v25 = vpop.permute.xlu1 %503 }
 0x31f   :  { %v516_v31 = vsel %vm515_vm8, %v514_v30, %v504_v25 }
 0x322   :  { %v507_v29 = vpop.permute.xlu1 %506 }
 0x323   :  { %v518_v32 = vsel %vm517_vm9, %v516_v31, %v507_v29 }
 0x324   :  { %v524_v33 = vmul.f32 %v522_v22, %v518_v32 }
 0x383   :  { %v533_v34 = vpop.permute.xlu1 %532 }
 0x384   :  { %v535_v35 = vadd.f32 %v533_v34, %v524_v33 }
 0x386   :  { %v536_v37 = vpack.c.bf16 %v535_v35, %v535_v35 }
 0x388   :  { %830 = vmatmul.mubr.msk.bf16.vlgmr.msra.gmra.mrb[8].mxu0 %vm355_vm3, %v536_v37 }
 0x389   :  { %834 = vmatpush3.bf16.msra.mxu0 %v890_v36  ;;  %839 = vmatprep.mubr.msk.bf16.mxu0 %vm1050_vm2, %v1049_v11 }
 0x38a   :  { %835 = vmatprep.subr.bf16.mxu0 %v1049_v11 }
 0x38d   :  { %836 = vmatpush3.bf16.msra.mxu0 %v891_v38 }
 0x38e   :  { %837 = vmatprep.subr.bf16.mxu0 %v1049_v11  ;;  %v788_v11 = vld [vmem:[%s1376_s14] ss:$0 sm:$0xff]  ;;  %s740_s14 = sshll.u32 %s1057_s13, 4  ;;  %s741_s14 = int_to_ptr.vmem [resolvable:$true] %s740_s14 }
 0x38f   :  { %s1011_s8 = scalar_lea.vmem %s741_s14, 128  ;;  %p1016_p13 = scmp.lt.s32.totalorder %s741_s14, %s741_s14 }
 0x390   :  { %p1012_p12 = scmp.ne.s32.totalorder %s741_s14, %s1011_s8  ;;  %p1017_p0 = scmp.lt.s32.totalorder %s1011_s8, %s1011_s8 }
 0x391   :  { %838 = vmatpush3.bf16.msra.mxu0 %v892_v39 }
 0x392   :  { %p1018_p1 = por %p1017_p0, %p1016_p13 }
 0x394   :  { %p1019_p2 = pnand %p1018_p1, %p1012_p12 }
 0x45b   :  { %v629_v41 = vpop.f32.mrb[8].mxu0 }
 0x45c   :  { %v630_v43 = vadd.f32 %v779_v40, %v629_v41  ;;  %v831_v44 = vpop.f32.mrb[9].mxu0 }
 0x45d   :  { %v632_v45 = vpop.f32.mrb[10].mxu0 }
 0x45e   :  { %v642_v46 = vmul.f32 %v787_v42, %v630_v43  ;;  %v832_v47 = vpop.f32.mrb[11].mxu0 }
 0x460   :  { %v650_v48 = vadd.f32 %v788_v11, %v642_v46 }
 0x462   :  { %v651_v49 = vpack.c.bf16 %v650_v48, %v650_v48 }
 0x464   :  { %840 = vmatmul.mubr.msk.bf16.vlgmr.msra.gmra.mrb[12].mxu0 %vm513_vm7, %v651_v49 }
 0x537   :  { %v720_v51 = vpop.f32.mrb[12].mxu0 }
 0x538   :  { %v721_v52 = vadd.f32 %v789_v50, %v720_v51  ;;  %v841_v53 = vpop.f32.mrb[13].mxu0 }
 0x539   :  { %v723_v54 = vpop.f32.mrb[14].mxu0 }
 0x53a   :  { %v794_v55 = vmul.f32 -1.442695, %v721_v52  ;;  %v842_v56 = vpop.f32.mrb[15].mxu0 }
 0x53c   :  { %897 = vpow2.f32 %v794_v55 }
 0x546   :  { %v898_v57 = vpop.eup %897 }
 0x547   :  { %v729_v58 = vadd.f32 1.0, %v898_v57 }
 0x549   :  { %899 = vrcp.f32 %v729_v58 }
 0x553   :  { %v900_v59 = vpop.eup %899 }
 0x554   :  { %733 = vst.msk [vmem:[#allocation11] sm:$0xff] %vm732_vm10, %v900_v59 }
 0x555   :  { %1022 = shalt.err (!%p1019_p2)
}
 0x556   :  { %s1390_s7 = sld [smem:[#allocation19_spill]] }
 0x55c   :  { %s1023_s25 = scalar_lea.hbm %s1390_s7, 128 }
 0x55d   :  { %p1024_p3 = scmp.ne.s32.totalorder %s1390_s7, %s1023_s25  ;;  %p1027_p4 = scmp.lt.u32.totalorder %s1023_s25, %s1390_s7 }
 0x55f   :  { %p1029_p5 = pnand %p1027_p4, %p1024_p3 }
 0x561   :  { %1032 = shalt.err (!%p1029_p5)
}
 0x562   :  { %743 = dma.vmem_to_hbm [thread:$0]  %s741_s14, 128, %s1390_s7, [#allocation4]  }
 0x563   :  { %1039 = dma.done.wait [#allocation4], 128  }
 0x564   :  { %1040 = vsyncadd [#allocation4], 4294967168 }
 0x565   :  { %747 = vsyncpa [#allocation3], 1 }
 0x566   :  { %748 = vsyncpa [#allocation6], 1 }
 0x567   :  { %749 = vsyncpa [#allocation9], 1 }
 0x568   :  { %750 = vsyncpa [#allocation4], 1 }

</bundles_post_ra>
